<compile_context>
chip_gen: v5e
topology: v5e:2x2
jax: 0.10.0
libtpu: 0.0.40
codegen_flags: <defaults>
</compile_context>

<pallas_src>
import math
import functools

import jax
import jax.numpy as jnp
from jax import lax
from jax.experimental import pallas as pl
from jax.experimental.pallas import tpu as pltpu


def _mha_kernel(q_ref, k_ref, v_ref, wq_ref, wo_ref, bq_ref, bo_ref,
                o_ref, comb_scr, *, num_heads):
    """One (batch, query-tile) grid step.

    q_ref:    (1, TQ, D) bf16  raw queries
    k_ref:    (1, S,  D) bf16  pre-projected keys   (x @ W_k^T + b_k)
    v_ref:    (1, S,  D) bf16  pre-projected values (x @ W_v^T + b_v)
    wq_ref:   (D, D)     bf16  W_q^T with 1/sqrt(d_k) folded in
    wo_ref:   (D, D)     bf16  W_o^T
    bq_ref / bo_ref: (1, D) f32 biases (b_q pre-scaled by 1/sqrt(d_k))
    comb_scr: (TQ, D)    bf16  scratch holding the concatenated head outputs
    """
    D = q_ref.shape[-1]
    d_k = D // num_heads

    # Q projection for this query tile (attention scale already folded in).
    q_p = (jnp.dot(q_ref[0], wq_ref[...], preferred_element_type=jnp.float32)
           + bq_ref[0])
    q_bf = q_p.astype(jnp.bfloat16)                                # (TQ, D)

    k_all = k_ref[0]                                               # (S, D) bf16
    v_all = v_ref[0]

    # Per-head attention; each head lands in its slice of comb_scr so a single
    # (TQ, D) x (D, D) matmul applies W_o after the loop.
    # TODO(synk): switch to a lax.fori_loop over heads (pl.ds slices) once
    # num_heads > 8 to bound live ranges of the (TQ, S) score temporaries.
    for h in range(num_heads):
        lo = h * d_k
        qh = q_bf[:, lo:lo + d_k]                                  # (TQ, d_k)
        kh = k_all[:, lo:lo + d_k]                                 # (S, d_k)
        vh = v_all[:, lo:lo + d_k]

        # scores = qh @ kh^T without materializing a transpose.
        scores = lax.dot_general(
            qh, kh, (((1,), (1,)), ((), ())),
            preferred_element_type=jnp.float32)                    # (TQ, S)
        m = jnp.max(scores, axis=-1, keepdims=True)
        e = jnp.exp(scores - m)
        probs = e * pl.reciprocal(jnp.sum(e, axis=-1, keepdims=True),
                                  approx=True)
        attn_h = jnp.dot(probs.astype(jnp.bfloat16), vh,
                         preferred_element_type=jnp.float32)       # (TQ, d_k)
        comb_scr[:, lo:lo + d_k] = attn_h.astype(jnp.bfloat16)

    out = (jnp.dot(comb_scr[...], wo_ref[...],
                   preferred_element_type=jnp.float32) + bo_ref[0])
    o_ref[0] = out.astype(o_ref.dtype)
    # TODO(synk): optional attention mask (mask=None path only) and flash-style
    # streaming of K/V tiles (running max/sum, memory_space=pl.ANY + manual
    # double-buffered DMA) for S >= 8k so per-step residency stays O(TQ*D+Tk*D).


def prepare_params(params, num_heads, compute_dtype=jnp.bfloat16):
    """One-time prep: PyTorch (out,in) -> (in,out) transpose, bf16 cast, and
    folding of the 1/sqrt(d_k) attention scale into W_q / b_q."""
    D = params["wq"].shape[0]
    inv_sqrt_dk = 1.0 / math.sqrt(D // num_heads)
    prep = {}
    for n in ("q", "k", "v", "o"):
        w = jnp.asarray(params["w" + n], jnp.float32).T            # (in, out)
        b = jnp.asarray(params["b" + n], jnp.float32).reshape(1, D)
        if n == "q":
            w = w * inv_sqrt_dk
            b = b * inv_sqrt_dk
        prep["w" + n] = w.astype(compute_dtype)
        prep["b" + n] = b
    return prep


def multi_head_attention(q, k, v, prepared, num_heads, q_tile=256):
    """q, k, v: (B, S, D) float32.  `prepared` comes from prepare_params().

    K/V are projected here with plain XLA matmuls (peak-MXU dense GEMMs) and
    handed to the kernel pre-projected in bf16; the kernel fuses Q projection,
    per-head softmax attention and the output projection per query tile.
    On v6e (128 MiB VMEM) q_tile=512 is a good setting; 256 fits v5e / v7x.
    """
    B, S, D = q.shape
    assert D % num_heads == 0
    TQ = min(q_tile, S)
    assert S % TQ == 0, "sequence length must be a multiple of the query tile"
    nq = S // TQ

    bf16 = jnp.bfloat16
    q_bf = q.astype(bf16)
    k_p = (jnp.einsum("bsd,df->bsf", k.astype(bf16), prepared["wk"],
                      preferred_element_type=jnp.float32)
           + prepared["bk"]).astype(bf16)
    v_p = (jnp.einsum("bsd,df->bsf", v.astype(bf16), prepared["wv"],
                      preferred_element_type=jnp.float32)
           + prepared["bv"]).astype(bf16)

    # Per-step Q / output tiles keep default double-buffering; everything whose
    # block index is constant within a batch (weights, biases, projected K/V)
    # is single-buffered to cut VMEM residency (critical on v7x's 64 MiB).
    q_spec = pl.BlockSpec((1, TQ, D), lambda b, qi: (b, qi, 0))
    kv_spec = pl.BlockSpec((1, S, D), lambda b, qi: (b, 0, 0),
                           pipeline_mode=pl.Buffered(1))
    w_spec = pl.BlockSpec((D, D), lambda b, qi: (0, 0),
                          pipeline_mode=pl.Buffered(1))
    b_spec = pl.BlockSpec((1, D), lambda b, qi: (0, 0),
                          pipeline_mode=pl.Buffered(1))
    out_spec = pl.BlockSpec((1, TQ, D), lambda b, qi: (b, qi, 0))

    # Explicit scoped-VMEM budget (scoped defaults: 16 MiB v5e / 32 MiB v6e,v7x;
    # keep headroom below v7x's 64 MiB physical VMEM).
    vmem_need = (2 * TQ * D * 2          # Q tiles (bf16, double-buffered)
                 + 2 * S * D * 2         # projected K + V (bf16, single-buf)
                 + 2 * D * D * 2         # W_q + W_o (bf16, single-buf)
                 + 2 * TQ * D * 4        # output tiles (f32, double-buffered)
                 + TQ * D * 2            # combined-heads scratch
                 + 4 * TQ * S * 4)       # softmax temporaries (f32)
    vmem_limit = int(min(max(2 * vmem_need, 32 * 1024 * 1024),
                         56 * 1024 * 1024))

    flops = 4 * B * S * D * D + 4 * B * S * S * D    # Q/O projections + QK^T + PV
    bytes_accessed = (3 * B * S * D * 2              # q, k_p, v_p (bf16)
                      + 2 * D * D * 2 + 2 * D * 4    # weights + biases
                      + B * S * D * 4)               # f32 output
    cost = pl.CostEstimate(flops=flops,
                           transcendentals=B * S * S,
                           bytes_accessed=bytes_accessed)

    kernel = functools.partial(_mha_kernel, num_heads=num_heads)

    return pl.pallas_call(
        kernel,
        out_shape=jax.ShapeDtypeStruct((B, S, D), q.dtype),
        grid_spec=pltpu.PrefetchScalarGridSpec(
            num_scalar_prefetch=0,
            grid=(B, nq),
            in_specs=[q_spec, kv_spec, kv_spec,
                      w_spec, w_spec, b_spec, b_spec],
            out_specs=out_spec,
            scratch_shapes=[pltpu.VMEM((TQ, D), bf16)],   # combined heads
        ),
        compiler_params=pltpu.CompilerParams(
            dimension_semantics=("parallel", "parallel"),
            vmem_limit_bytes=vmem_limit),
        cost_estimate=cost,
    )(q_bf, k_p, v_p,
      prepared["wq"], prepared["wo"], prepared["bq"], prepared["bo"])


def _reference_mha(q, k, v, params, num_heads):
    """Pure-JAX f32 reference mirroring the PyTorch forward (mask=None)."""
    B, S, D = q.shape
    d_k = D // num_heads

    def lin(x, w, b):
        return jnp.einsum("bsd,od->bso", x, w) + b

    def split(x):
        return x.reshape(B, S, num_heads, d_k).transpose(0, 2, 1, 3)

    Q = split(lin(q, params["wq"], params["bq"]))
    K = split(lin(k, params["wk"], params["bk"]))
    V = split(lin(v, params["wv"], params["bv"]))

    scores = jnp.einsum("bhqd,bhkd->bhqk", Q, K) / math.sqrt(d_k)
    probs = jax.nn.softmax(scores, axis=-1)
    attn = jnp.einsum("bhqk,bhkd->bhqd", probs, V)
    combined = attn.transpose(0, 2, 1, 3).reshape(B, S, D)
    return jnp.einsum("bsd,od->bso", combined, params["wo"]) + params["bo"]


def _init_params(key, d_model):
    """Deterministic init mimicking nn.Linear default (uniform +-1/sqrt(in))."""
    bound = 1.0 / math.sqrt(d_model)
    keys = jax.random.split(key, 8)
    names = ["wq", "wk", "wv", "wo"]
    params = {}
    for i, n in enumerate(names):
        params[n] = jax.random.uniform(
            keys[2 * i], (d_model, d_model), jnp.float32, -bound, bound)
        params["b" + n[1]] = jax.random.uniform(
            keys[2 * i + 1], (d_model,), jnp.float32, -bound, bound)
    return params


if __name__ == "__main__":
    B, S, D, H = 2, 16, 32, 4   # small shapes; q_tile=8 exercises the seq tiling

    root = jax.random.PRNGKey(0)
    kq, kk, kv, kp = jax.random.split(root, 4)
    q = jax.random.normal(kq, (B, S, D), jnp.float32)
    k = jax.random.normal(kk, (B, S, D), jnp.float32)
    v = jax.random.normal(kv, (B, S, D), jnp.float32)
    params = _init_params(kp, D)
    prepared = prepare_params(params, H)

    out = multi_head_attention(q, k, v, prepared, H, q_tile=8)
    out = jax.block_until_ready(out)

    ref = _reference_mha(q, k, v, params, H)
    assert out.shape == (B, S, D)
    max_err = float(jnp.max(jnp.abs(out - ref)))
    assert jnp.allclose(out, ref, atol=2e-2, rtol=2e-2), \
        f"mismatch vs reference (max abs err {max_err})"

    print("KERNEL_OK")
</pallas_src>

<mosaic_0001>
module attributes {stable_mosaic.version = 11 : i64} {
  func.func @_mha_kernel(%arg0: i32, %arg1: i32, %arg2: memref<1x8x32xbf16, #tpu.memory_space<vmem>>, %arg3: memref<1x16x32xbf16, #tpu.memory_space<vmem>>, %arg4: memref<1x16x32xbf16, #tpu.memory_space<vmem>>, %arg5: memref<32x32xbf16, #tpu.memory_space<vmem>>, %arg6: memref<32x32xbf16, #tpu.memory_space<vmem>>, %arg7: memref<1x32xf32, #tpu.memory_space<vmem>>, %arg8: memref<1x32xf32, #tpu.memory_space<vmem>>, %arg9: memref<1x8x32xf32, #tpu.memory_space<vmem>>, %arg10: memref<8x32xbf16, #tpu.memory_space<vmem>>) attributes {dimension_semantics = [#tpu.dimension_semantics<parallel>, #tpu.dimension_semantics<parallel>], iteration_bounds = array<i64: 2, 2>, scalar_prefetch = 0 : i64, scratch_operands = 1 : i64, tpu.core_type = #tpu.core_type<tc>, window_params = [{transform_indices = @transform_0, window_bounds = array<i64: 1, 8, 32>}, {pipeline_mode = #tpu.pipeline_mode<synchronous>, transform_indices = @transform_1, window_bounds = array<i64: 1, 16, 32>}, {pipeline_mode = #tpu.pipeline_mode<synchronous>, transform_indices = @transform_2, window_bounds = array<i64: 1, 16, 32>}, {pipeline_mode = #tpu.pipeline_mode<synchronous>, transform_indices = @transform_3, window_bounds = array<i64: 32, 32>}, {pipeline_mode = #tpu.pipeline_mode<synchronous>, transform_indices = @transform_4, window_bounds = array<i64: 32, 32>}, {pipeline_mode = #tpu.pipeline_mode<synchronous>, transform_indices = @transform_5, window_bounds = array<i64: 1, 32>}, {pipeline_mode = #tpu.pipeline_mode<synchronous>, transform_indices = @transform_6, window_bounds = array<i64: 1, 32>}, {transform_indices = @transform_7, window_bounds = array<i64: 1, 8, 32>}]} {
    %c0 = arith.constant 0 : index
    %c0_0 = arith.constant 0 : index
    %c0_1 = arith.constant 0 : index
    %0 = vector.load %arg2[%c0, %c0_0, %c0_1] : memref<1x8x32xbf16, #tpu.memory_space<vmem>>, vector<1x8x32xbf16>
    %1 = vector.shape_cast %0 : vector<1x8x32xbf16> to vector<8x32xbf16>
    %c0_2 = arith.constant 0 : index
    %c0_3 = arith.constant 0 : index
    %2 = vector.load %arg5[%c0_2, %c0_3] : memref<32x32xbf16, #tpu.memory_space<vmem>>, vector<32x32xbf16>
    %cst = arith.constant dense<0.000000e+00> : vector<8x32xf32>
    %3 = tpu.matmul %1, %2, %cst {dimension_numbers = #tpu.dot_dimension_numbers<[1], [0], [0], [1], [0, 0, 1, 1], [], []>} : vector<8x32xbf16>, vector<32x32xbf16>, vector<8x32xf32> -> vector<8x32xf32>
    %c0_4 = arith.constant 0 : index
    %c0_5 = arith.constant 0 : index
    %4 = vector.load %arg7[%c0_4, %c0_5] : memref<1x32xf32, #tpu.memory_space<vmem>>, vector<1x32xf32>
    %5 = vector.shape_cast %4 : vector<1x32xf32> to vector<32xf32>
    %6 = vector.shape_cast %5 : vector<32xf32> to vector<1x32xf32>
    %7 = vector.broadcast %6 : vector<1x32xf32> to vector<8x32xf32>
    %8 = arith.addf %3, %7 : vector<8x32xf32>
    %9 = arith.truncf %8 : vector<8x32xf32> to vector<8x32xbf16>
    %c0_6 = arith.constant 0 : index
    %c0_7 = arith.constant 0 : index
    %c0_8 = arith.constant 0 : index
    %10 = vector.load %arg3[%c0_6, %c0_7, %c0_8] : memref<1x16x32xbf16, #tpu.memory_space<vmem>>, vector<1x16x32xbf16>
    %11 = vector.shape_cast %10 : vector<1x16x32xbf16> to vector<16x32xbf16>
    %c0_9 = arith.constant 0 : index
    %c0_10 = arith.constant 0 : index
    %c0_11 = arith.constant 0 : index
    %12 = vector.load %arg4[%c0_9, %c0_10, %c0_11] : memref<1x16x32xbf16, #tpu.memory_space<vmem>>, vector<1x16x32xbf16>
    %13 = vector.shape_cast %12 : vector<1x16x32xbf16> to vector<16x32xbf16>
    %14 = vector.extract_strided_slice %9 {offsets = [0, 0], sizes = [8, 8], strides = [1, 1]} : vector<8x32xbf16> to vector<8x8xbf16>
    %15 = vector.extract_strided_slice %11 {offsets = [0, 0], sizes = [16, 8], strides = [1, 1]} : vector<16x32xbf16> to vector<16x8xbf16>
    %16 = vector.extract_strided_slice %13 {offsets = [0, 0], sizes = [16, 8], strides = [1, 1]} : vector<16x32xbf16> to vector<16x8xbf16>
    %cst_12 = arith.constant dense<0.000000e+00> : vector<8x16xf32>
    %17 = tpu.matmul %14, %15, %cst_12 {dimension_numbers = #tpu.dot_dimension_numbers<[1], [1], [0], [0], [0, 0, 1, 0], [], []>} : vector<8x8xbf16>, vector<16x8xbf16>, vector<8x16xf32> -> vector<8x16xf32>
    %cst_13 = arith.constant dense<0xFF800000> : vector<8xf32>
    %18 = vector.multi_reduction <maximumf>, %17, %cst_13 [1] : vector<8x16xf32> to vector<8xf32>
    %19 = vector.shape_cast %18 : vector<8xf32> to vector<8x1xf32>
    %20 = vector.broadcast %19 : vector<8x1xf32> to vector<8x16xf32>
    %21 = arith.subf %17, %20 : vector<8x16xf32>
    %22 = math.exp %21 : vector<8x16xf32>
    %cst_14 = arith.constant dense<0.000000e+00> : vector<8xf32>
    %23 = vector.multi_reduction <add>, %22, %cst_14 [1] : vector<8x16xf32> to vector<8xf32>
    %24 = vector.shape_cast %23 : vector<8xf32> to vector<8x1xf32>
    %25 = tpu.reciprocal %24 {approx = true} : vector<8x1xf32> -> vector<8x1xf32>
    %26 = vector.broadcast %25 : vector<8x1xf32> to vector<8x16xf32>
    %27 = arith.mulf %22, %26 : vector<8x16xf32>
    %28 = arith.truncf %27 : vector<8x16xf32> to vector<8x16xbf16>
    %cst_15 = arith.constant dense<0.000000e+00> : vector<8x8xf32>
    %29 = tpu.matmul %28, %16, %cst_15 {dimension_numbers = #tpu.dot_dimension_numbers<[1], [0], [0], [1], [0, 0, 1, 1], [], []>} : vector<8x16xbf16>, vector<16x8xbf16>, vector<8x8xf32> -> vector<8x8xf32>
    %30 = arith.truncf %29 : vector<8x8xf32> to vector<8x8xbf16>
    %c0_16 = arith.constant 0 : index
    %c0_17 = arith.constant 0 : index
    %31 = vector.load %arg10[%c0_16, %c0_17] : memref<8x32xbf16, #tpu.memory_space<vmem>>, vector<8x8xbf16>
    tpu.vector_store %arg10[%c0_16, %c0_17], %30 {strides = array<i32>} : memref<8x32xbf16, #tpu.memory_space<vmem>>, vector<8x8xbf16>,
    %32 = vector.extract_strided_slice %9 {offsets = [0, 8], sizes = [8, 8], strides = [1, 1]} : vector<8x32xbf16> to vector<8x8xbf16>
    %33 = vector.extract_strided_slice %11 {offsets = [0, 8], sizes = [16, 8], strides = [1, 1]} : vector<16x32xbf16> to vector<16x8xbf16>
    %34 = vector.extract_strided_slice %13 {offsets = [0, 8], sizes = [16, 8], strides = [1, 1]} : vector<16x32xbf16> to vector<16x8xbf16>
    %cst_18 = arith.constant dense<0.000000e+00> : vector<8x16xf32>
    %35 = tpu.matmul %32, %33, %cst_18 {dimension_numbers = #tpu.dot_dimension_numbers<[1], [1], [0], [0], [0, 0, 1, 0], [], []>} : vector<8x8xbf16>, vector<16x8xbf16>, vector<8x16xf32> -> vector<8x16xf32>
    %cst_19 = arith.constant dense<0xFF800000> : vector<8xf32>
    %36 = vector.multi_reduction <maximumf>, %35, %cst_19 [1] : vector<8x16xf32> to vector<8xf32>
    %37 = vector.shape_cast %36 : vector<8xf32> to vector<8x1xf32>
    %38 = vector.broadcast %37 : vector<8x1xf32> to vector<8x16xf32>
    %39 = arith.subf %35, %38 : vector<8x16xf32>
    %40 = math.exp %39 : vector<8x16xf32>
    %cst_20 = arith.constant dense<0.000000e+00> : vector<8xf32>
    %41 = vector.multi_reduction <add>, %40, %cst_20 [1] : vector<8x16xf32> to vector<8xf32>
    %42 = vector.shape_cast %41 : vector<8xf32> to vector<8x1xf32>
    %43 = tpu.reciprocal %42 {approx = true} : vector<8x1xf32> -> vector<8x1xf32>
    %44 = vector.broadcast %43 : vector<8x1xf32> to vector<8x16xf32>
    %45 = arith.mulf %40, %44 : vector<8x16xf32>
    %46 = arith.truncf %45 : vector<8x16xf32> to vector<8x16xbf16>
    %cst_21 = arith.constant dense<0.000000e+00> : vector<8x8xf32>
    %47 = tpu.matmul %46, %34, %cst_21 {dimension_numbers = #tpu.dot_dimension_numbers<[1], [0], [0], [1], [0, 0, 1, 1], [], []>} : vector<8x16xbf16>, vector<16x8xbf16>, vector<8x8xf32> -> vector<8x8xf32>
    %48 = arith.truncf %47 : vector<8x8xf32> to vector<8x8xbf16>
    %c0_22 = arith.constant 0 : index
    %c8 = arith.constant 8 : index
    %49 = vector.load %arg10[%c0_22, %c8] : memref<8x32xbf16, #tpu.memory_space<vmem>>, vector<8x8xbf16>
    tpu.vector_store %arg10[%c0_22, %c8], %48 {strides = array<i32>} : memref<8x32xbf16, #tpu.memory_space<vmem>>, vector<8x8xbf16>,
    %50 = vector.extract_strided_slice %9 {offsets = [0, 16], sizes = [8, 8], strides = [1, 1]} : vector<8x32xbf16> to vector<8x8xbf16>
    %51 = vector.extract_strided_slice %11 {offsets = [0, 16], sizes = [16, 8], strides = [1, 1]} : vector<16x32xbf16> to vector<16x8xbf16>
    %52 = vector.extract_strided_slice %13 {offsets = [0, 16], sizes = [16, 8], strides = [1, 1]} : vector<16x32xbf16> to vector<16x8xbf16>
    %cst_23 = arith.constant dense<0.000000e+00> : vector<8x16xf32>
    %53 = tpu.matmul %50, %51, %cst_23 {dimension_numbers = #tpu.dot_dimension_numbers<[1], [1], [0], [0], [0, 0, 1, 0], [], []>} : vector<8x8xbf16>, vector<16x8xbf16>, vector<8x16xf32> -> vector<8x16xf32>
    %cst_24 = arith.constant dense<0xFF800000> : vector<8xf32>
    %54 = vector.multi_reduction <maximumf>, %53, %cst_24 [1] : vector<8x16xf32> to vector<8xf32>
    %55 = vector.shape_cast %54 : vector<8xf32> to vector<8x1xf32>
    %56 = vector.broadcast %55 : vector<8x1xf32> to vector<8x16xf32>
    %57 = arith.subf %53, %56 : vector<8x16xf32>
    %58 = math.exp %57 : vector<8x16xf32>
    %cst_25 = arith.constant dense<0.000000e+00> : vector<8xf32>
    %59 = vector.multi_reduction <add>, %58, %cst_25 [1] : vector<8x16xf32> to vector<8xf32>
    %60 = vector.shape_cast %59 : vector<8xf32> to vector<8x1xf32>
    %61 = tpu.reciprocal %60 {approx = true} : vector<8x1xf32> -> vector<8x1xf32>
    %62 = vector.broadcast %61 : vector<8x1xf32> to vector<8x16xf32>
    %63 = arith.mulf %58, %62 : vector<8x16xf32>
    %64 = arith.truncf %63 : vector<8x16xf32> to vector<8x16xbf16>
    %cst_26 = arith.constant dense<0.000000e+00> : vector<8x8xf32>
    %65 = tpu.matmul %64, %52, %cst_26 {dimension_numbers = #tpu.dot_dimension_numbers<[1], [0], [0], [1], [0, 0, 1, 1], [], []>} : vector<8x16xbf16>, vector<16x8xbf16>, vector<8x8xf32> -> vector<8x8xf32>
    %66 = arith.truncf %65 : vector<8x8xf32> to vector<8x8xbf16>
    %c0_27 = arith.constant 0 : index
    %c16 = arith.constant 16 : index
    %67 = vector.load %arg10[%c0_27, %c16] : memref<8x32xbf16, #tpu.memory_space<vmem>>, vector<8x8xbf16>
    tpu.vector_store %arg10[%c0_27, %c16], %66 {strides = array<i32>} : memref<8x32xbf16, #tpu.memory_space<vmem>>, vector<8x8xbf16>,
    %68 = vector.extract_strided_slice %9 {offsets = [0, 24], sizes = [8, 8], strides = [1, 1]} : vector<8x32xbf16> to vector<8x8xbf16>
    %69 = vector.extract_strided_slice %11 {offsets = [0, 24], sizes = [16, 8], strides = [1, 1]} : vector<16x32xbf16> to vector<16x8xbf16>
    %70 = vector.extract_strided_slice %13 {offsets = [0, 24], sizes = [16, 8], strides = [1, 1]} : vector<16x32xbf16> to vector<16x8xbf16>
    %cst_28 = arith.constant dense<0.000000e+00> : vector<8x16xf32>
    %71 = tpu.matmul %68, %69, %cst_28 {dimension_numbers = #tpu.dot_dimension_numbers<[1], [1], [0], [0], [0, 0, 1, 0], [], []>} : vector<8x8xbf16>, vector<16x8xbf16>, vector<8x16xf32> -> vector<8x16xf32>
    %cst_29 = arith.constant dense<0xFF800000> : vector<8xf32>
    %72 = vector.multi_reduction <maximumf>, %71, %cst_29 [1] : vector<8x16xf32> to vector<8xf32>
    %73 = vector.shape_cast %72 : vector<8xf32> to vector<8x1xf32>
    %74 = vector.broadcast %73 : vector<8x1xf32> to vector<8x16xf32>
    %75 = arith.subf %71, %74 : vector<8x16xf32>
    %76 = math.exp %75 : vector<8x16xf32>
    %cst_30 = arith.constant dense<0.000000e+00> : vector<8xf32>
    %77 = vector.multi_reduction <add>, %76, %cst_30 [1] : vector<8x16xf32> to vector<8xf32>
    %78 = vector.shape_cast %77 : vector<8xf32> to vector<8x1xf32>
    %79 = tpu.reciprocal %78 {approx = true} : vector<8x1xf32> -> vector<8x1xf32>
    %80 = vector.broadcast %79 : vector<8x1xf32> to vector<8x16xf32>
    %81 = arith.mulf %76, %80 : vector<8x16xf32>
    %82 = arith.truncf %81 : vector<8x16xf32> to vector<8x16xbf16>
    %cst_31 = arith.constant dense<0.000000e+00> : vector<8x8xf32>
    %83 = tpu.matmul %82, %70, %cst_31 {dimension_numbers = #tpu.dot_dimension_numbers<[1], [0], [0], [1], [0, 0, 1, 1], [], []>} : vector<8x16xbf16>, vector<16x8xbf16>, vector<8x8xf32> -> vector<8x8xf32>
    %84 = arith.truncf %83 : vector<8x8xf32> to vector<8x8xbf16>
    %c0_32 = arith.constant 0 : index
    %c24 = arith.constant 24 : index
    %85 = vector.load %arg10[%c0_32, %c24] : memref<8x32xbf16, #tpu.memory_space<vmem>>, vector<8x8xbf16>
    tpu.vector_store %arg10[%c0_32, %c24], %84 {strides = array<i32>} : memref<8x32xbf16, #tpu.memory_space<vmem>>, vector<8x8xbf16>,
    %c0_33 = arith.constant 0 : index
    %c0_34 = arith.constant 0 : index
    %86 = vector.load %arg10[%c0_33, %c0_34] : memref<8x32xbf16, #tpu.memory_space<vmem>>, vector<8x32xbf16>
    %c0_35 = arith.constant 0 : index
    %c0_36 = arith.constant 0 : index
    %87 = vector.load %arg6[%c0_35, %c0_36] : memref<32x32xbf16, #tpu.memory_space<vmem>>, vector<32x32xbf16>
    %cst_37 = arith.constant dense<0.000000e+00> : vector<8x32xf32>
    %88 = tpu.matmul %86, %87, %cst_37 {dimension_numbers = #tpu.dot_dimension_numbers<[1], [0], [0], [1], [0, 0, 1, 1], [], []>} : vector<8x32xbf16>, vector<32x32xbf16>, vector<8x32xf32> -> vector<8x32xf32>
    %c0_38 = arith.constant 0 : index
    %c0_39 = arith.constant 0 : index
    %89 = vector.load %arg8[%c0_38, %c0_39] : memref<1x32xf32, #tpu.memory_space<vmem>>, vector<1x32xf32>
    %90 = vector.shape_cast %89 : vector<1x32xf32> to vector<32xf32>
    %91 = vector.shape_cast %90 : vector<32xf32> to vector<1x32xf32>
    %92 = vector.broadcast %91 : vector<1x32xf32> to vector<8x32xf32>
    %93 = arith.addf %88, %92 : vector<8x32xf32>
    %c0_40 = arith.constant 0 : index
    %c0_41 = arith.constant 0 : index
    %c0_42 = arith.constant 0 : index
    %94 = vector.load %arg9[%c0_40, %c0_41, %c0_42] : memref<1x8x32xf32, #tpu.memory_space<vmem>>, vector<1x8x32xf32>
    %95 = vector.shape_cast %94 : vector<1x8x32xf32> to vector<8x32xf32>
    %96 = vector.shape_cast %93 : vector<8x32xf32> to vector<1x8x32xf32>
    tpu.vector_store %arg9[%c0_40, %c0_41, %c0_42], %96 {strides = array<i32>} : memref<1x8x32xf32, #tpu.memory_space<vmem>>, vector<1x8x32xf32>,
    return
  }
  func.func @transform_0(%arg0: i32, %arg1: i32) -> (i32, i32, i32) {
    %c0_i32 = arith.constant 0 : i32
    %c0_i32_0 = arith.constant 0 : i32
    return %arg0, %arg1, %c0_i32 : i32, i32, i32
  }
  func.func @transform_1(%arg0: i32, %arg1: i32) -> (i32, i32, i32) {
    %c0_i32 = arith.constant 0 : i32
    %c0_i32_0 = arith.constant 0 : i32
    %c0_i32_1 = arith.constant 0 : i32
    return %arg0, %c0_i32, %c0_i32_0 : i32, i32, i32
  }
  func.func @transform_2(%arg0: i32, %arg1: i32) -> (i32, i32, i32) {
    %c0_i32 = arith.constant 0 : i32
    %c0_i32_0 = arith.constant 0 : i32
    %c0_i32_1 = arith.constant 0 : i32
    return %arg0, %c0_i32, %c0_i32_0 : i32, i32, i32
  }
  func.func @transform_3(%arg0: i32, %arg1: i32) -> (i32, i32) {
    %c0_i32 = arith.constant 0 : i32
    %c0_i32_0 = arith.constant 0 : i32
    %c0_i32_1 = arith.constant 0 : i32
    return %c0_i32, %c0_i32_0 : i32, i32
  }
  func.func @transform_4(%arg0: i32, %arg1: i32) -> (i32, i32) {
    %c0_i32 = arith.constant 0 : i32
    %c0_i32_0 = arith.constant 0 : i32
    %c0_i32_1 = arith.constant 0 : i32
    return %c0_i32, %c0_i32_0 : i32, i32
  }
  func.func @transform_5(%arg0: i32, %arg1: i32) -> (i32, i32) {
    %c0_i32 = arith.constant 0 : i32
    %c0_i32_0 = arith.constant 0 : i32
    %c0_i32_1 = arith.constant 0 : i32
    return %c0_i32, %c0_i32_0 : i32, i32
  }
  func.func @transform_6(%arg0: i32, %arg1: i32) -> (i32, i32) {
    %c0_i32 = arith.constant 0 : i32
    %c0_i32_0 = arith.constant 0 : i32
    %c0_i32_1 = arith.constant 0 : i32
    return %c0_i32, %c0_i32_0 : i32, i32
  }
  func.func @transform_7(%arg0: i32, %arg1: i32) -> (i32, i32, i32) {
    %c0_i32 = arith.constant 0 : i32
    %c0_i32_0 = arith.constant 0 : i32
    return %arg0, %arg1, %c0_i32 : i32, i32, i32
  }
}

</mosaic_0001>

<bundles_post_ra>
// kernel: tpu_custom_call.1
= control target key start
LH: loop header
LB: loop body
LE: loop exit
PB: predicated region body
PF: predicated region fallthrough
CT: control target
= control target key end

     0   :  { %s1743_s0 = inlined_call_operand.hbm [shape: bf16[2,16,32], index: 0, kind: input, shape index: {}]   ;;  %s1744_s1 = inlined_call_operand.hbm [shape: bf16[2,16,32], index: 1, kind: input, shape index: {}]   ;;  %s1745_s2 = inlined_call_operand.hbm [shape: bf16[2,16,32], index: 2, kind: input, shape index: {}]   ;;  %s1746_s3 = inlined_call_operand.hbm [shape: bf16[32,32], index: 3, kind: input, shape index: {}]   ;;  %s1747_s4 = inlined_call_operand.hbm [shape: bf16[32,32], index: 4, kind: input, shape index: {}]   ;;  %s1748_s5 = inlined_call_operand.vmem [shape: f32[1,32], index: 5, kind: input, shape index: {}]   ;;  %s1749_s6 = inlined_call_operand.vmem [shape: f32[1,32], index: 6, kind: input, shape index: {}]   ;;  %s1750_s7 = inlined_call_operand.hbm [shape: f32[2,16,32], index: 7, kind: output, shape index: {}]  }
   0x1   :  { %1757 = sst [smem:[#allocation22_spill]] %s1744_s1 }
   0x2   :  { %1758 = sst [smem:[#allocation23_spill]] %s1745_s2 }
   0x3   :  { %1759 = sst [smem:[#allocation24_spill]] %s1746_s3 }
   0x4   :  { %1760 = sst [smem:[#allocation25_spill]] %s1747_s4 }
   0x5   :  { %1761 = sst [smem:[#allocation26_spill]] %s1749_s6 }
   0x6   :  { %1762 = sst [smem:[#allocation27_spill]] %s1750_s7 }
   0x7   :  { %12 = vsyncpa [#allocation4], 0 }
   0x8   :  { %14 = vsyncpa [#allocation4 + $0x1], 0 }
   0x9   :  { %15 = vsyncpa [#allocation7], 0 }
   0xa   :  { %16 = vsyncpa [#allocation10], 0 }
   0xb   :  { %17 = vsyncpa [#allocation5], 0 }
   0xc   :  { %19 = vsyncpa [#allocation5 + $0x1], 0  ;;  %s1432_s24 = smov 0   ;;  %s1434_s25 = smov 0  }
   0xd   :  { %s1436_s26 = smov 0   ;;  %s1438_s27 = smov 0  }
   0xe   :  { %s1440_s28 = smov 0   ;;  %s1442_s29 = smov 0  }
   0xf   :  { %s1444_s30 = smov 0   ;;  %s1446_s8 = smov 0  }
  0x10   :  { %s1448_s9 = smov 0   ;;  %s1450_s10 = smov 0  }
  0x11   :  { %s1452_s11 = smov 0  }
  0x12 LB: > { %1763 = sst [smem:[#allocation17_spill]] %s1342_s25  ;;  %s1751_s12 = sadd.s32 4294967295, %s1378_s11   ;;  %s1378_s11 = sphi %s1452_s11, %s25_s11   ;;  %s1374_s10 = sphi %s1450_s10, %s1797_s10   ;;  %s1370_s9 = sphi %s1448_s9, %s1796_s9   ;;  %s1366_s8 = sphi %s1446_s8, %s1795_s8   ;;  %s1362_s30 = sphi %s1444_s30, %s1794_s30   ;;  %s1358_s29 = sphi %s1442_s29, %s1793_s29   ;;  %s1354_s28 = sphi %s1440_s28, %s1792_s28   ;;  %s1350_s27 = sphi %s1438_s27, %s1791_s27   ;;  %s1346_s26 = sphi %s1436_s26, %s1790_s26   ;;  %s1342_s25 = sphi %s1434_s25, %s1789_s25   ;;  %s1338_s24 = sphi %s1432_s24, %s1786_s24  }
  0x13   : > { %1764 = sst [smem:[#allocation18_spill]] %s1362_s30  ;;  %p85_p0 = scmp.ne.s32.totalorder %s1342_s25, %s1338_s24 }
  0x14   : > { %p1489_p1 = scmp.eq.s32.totalorder %s1751_s12, 0  ;;  %p874_p2 = scmp.ge.s32.totalorder %s1378_s11, 1 }
  0x15   : > { %p234_p3 = scmp.lt.s32.totalorder %s1378_s11, 5  ;;  %s929_s14 = sshll.u32 %s1366_s8, 3 }
  0x16   : > { %p1498_p4 = por %p85_p0, %p1489_p1  ;;  %s1767_s1 = sld [smem:[#allocation22_spill]] }
  0x17   : > { %p1505_p5 = pnand %p874_p2, %p234_p3  ;;  %s1380_s21 = smov [#allocation6]  }
  0x18   : > { %s250_s22 = sshll.u32 %s1380_s21, 4  ;;  %s1770_s2 = sld [smem:[#allocation23_spill]]  ;;  %s251_s22 = int_to_ptr.vmem [resolvable:$true] %s250_s22 }
  0x19   : > { %p953_p6 = pneg %p1505_p5 }
  0x1b   : > { %p1516_p7 = pnand %p953_p6, %p1498_p4 }
  0x1c   : > { %s247_s18 = scalar_lea.hbm %s1767_s1, %s929_s14  ;;  %s1105_s7 = scalar_lea.hbm %s1767_s1, 16 }
  0x1d   : > { %s248_s20 = sshll.u32 %s247_s18, 4  ;;  %p1102_p9 = pneg %p1516_p7  ;;  %s249_s20 = int_to_ptr.hbm [resolvable:$true] %s248_s20 }
  0x1e   : > { %s264_s17 = scalar_lea.hbm %s1770_s2, %s929_s14  ;;  %s1098_s12 = sshra.s32 %s249_s20, 4  ;;  %s1099_s12 = int_to_ptr.hbm [resolvable:$true] %s1098_s12 }
  0x1f   : > { %s265_s18 = sshll.u32 %s264_s17, 4  ;;  %s1100_s25 = scalar_lea.hbm %s1099_s12, 8  ;;  %s266_s18 = int_to_ptr.hbm [resolvable:$true] %s265_s18 }
  0x20   : > { %p1101_p8 = scmp.ne.s32.totalorder %s1099_s12, %s1100_s25  ;;  %p1106_p12 = scmp.lt.s32.totalorder %s1099_s12, %s1767_s1 }
  0x21   : > { %p1107_p13 = scmp.lt.s32.totalorder %s1105_s7, %s1100_s25 }
  0x22   : > { %p1103_p10 = pnand %p1102_p9, %p1101_p8 }
  0x23   : > { %p1108_p0 = por %p1107_p13, %p1106_p12 }
  0x24   : > { %p1104_p11 = pneg %p1103_p10 }
  0x26   : > { %p1109_p2 = pnand %p1108_p0, %p1104_p11 }
  0x28   : > { %1112 = shalt.err (!%p1109_p2)
}
  0x29   : > { %s1381_s14 = smov 64   ;;  %s1382_s16 = smov 4  }
  0x2a   : > { %956 = dma.hbm_to_vmem [thread:$0]  (!%p1516_p7), %s249_s20, 128, %s251_s22, [#allocation7], %s1381_s14, %s1381_s14, %s1382_s16  }
  0x2b   : > { %s1771_s3 = sld [smem:[#allocation24_spill]]  ;;  %s1383_s7 = smov [#allocation9]  }
  0x2c   : > { %s281_s25 = sshll.u32 %s1383_s7, 4  ;;  %p1547_p3 = pnand %p953_p6, %p1489_p1  ;;  %s282_s25 = int_to_ptr.vmem [resolvable:$true] %s281_s25 }
  0x2d   : > { %s1384_s12 = smov [#allocation8]   ;;  %s1773_s4 = sld [smem:[#allocation25_spill]] }
  0x2e   : > { %s267_s20 = sshll.u32 %s1384_s12, 4  ;;  %s1158_s17 = sshra.s32 %s266_s18, 4  ;;  %s268_s20 = int_to_ptr.vmem [resolvable:$true] %s267_s20  ;;  %s1159_s17 = int_to_ptr.hbm [resolvable:$true] %s1158_s17 }
  0x2f   : > { %s1160_s7 = scalar_lea.hbm %s1159_s17, 8  ;;  %p1166_p11 = scmp.lt.s32.totalorder %s1159_s17, %s1770_s2 }
  0x30   : > { %p1161_p6 = scmp.ne.s32.totalorder %s1159_s17, %s1160_s7 }
  0x31   : > { %s279_s21 = sshll.u32 %s1771_s3, 4  ;;  %s280_s21 = int_to_ptr.hbm [resolvable:$true] %s279_s21 }
  0x32   : > { %962 = dma.hbm_to_vmem [thread:$0]  (!%p1547_p3), %s280_s21, 256, %s282_s25, [#allocation10], %s1381_s14, %s1381_s14, %s1382_s16  }
  0x33   : > { %s293_s6 = sshll.u32 %s1773_s4, 4  ;;  %p1163_p8 = pnand %p1161_p6, %p1102_p9  ;;  %s294_s6 = int_to_ptr.hbm [resolvable:$true] %s293_s6 }
  0x34   : > { %s1165_s21 = scalar_lea.hbm %s1770_s2, 16 }
  0x35   : > { %p1164_p10 = pneg %p1163_p8  ;;  %p1167_p12 = scmp.lt.s32.totalorder %s1165_s21, %s1160_s7 }
  0x37   : > { %p1168_p13 = por %p1167_p12, %p1166_p11 }
  0x39   : > { %p1169_p0 = pnand %p1168_p13, %p1164_p10 }
  0x3b   : > { %1172 = shalt.err (!%p1169_p0)
}
  0x3c   : > { %959 = dma.hbm_to_vmem [thread:$0]  (!%p1516_p7), %s266_s18, 128, %s268_s20, [#allocation7], %s1381_s14, %s1381_s14, %s1382_s16  }
  0x3d   : > { %s1385_s1 = smov [#allocation11]   ;;  %s873_s23 = sadd.s32 4294967294, %s1378_s11  }
  0x3e   : > { %s295_s3 = sshll.u32 %s1385_s1, 4  ;;  %s34_s22 = sadd.s32 1, %s1370_s9  ;;  %s296_s3 = int_to_ptr.vmem [resolvable:$true] %s295_s3 }
  0x3f   : > { %965 = dma.hbm_to_vmem [thread:$0]  (!%p1547_p3), %s294_s6, 256, %s296_s3, [#allocation10], %s1381_s14, %s1381_s14, %s1382_s16  }
  0x40   : > { %s37_s24 = sadd.s32 1, %s1374_s10  ;;  %p35_p9 = scmp.ge.s32.totalorder %s34_s22, 2 }
  0x41   : > { %s46_s17 = sadd.s32 1, %s1358_s29  ;;  %p53_p7 = scmp.ne.s32.totalorder %s1358_s29, %s1354_s28 }
  0x42   : > { %p54_p2 = scmp.eq.s32.totalorder %s1378_s11, 0  ;;  %s1799_s22 = smov (%p35_p9, %s34_s22), 0 }
  0x43   : > { %1774 = sst [smem:[#allocation19_spill]] %s1799_s22  ;;  %s1801_s24 = smov (!%p35_p9, %s37_s24), %s1374_s10 }
  0x44   : > { %s42_s18 = ssub.s32 %s1370_s9, %s1799_s22  ;;  %p1590_p6 = por %p54_p2, %p53_p7 }
  0x45   : > { %p39_p3 = scmp.ge.s32.totalorder %s1801_s24, 2  ;;  %p59_p8 = scmp.ne.s32.totalorder %s1354_s28, %s1350_s27 }
  0x46   : > { %s72_s14 = sadd.s32 1, %s1346_s26  ;;  %s1776_s16 = sadd.s32 4294967295, %s1378_s11  }
  0x47   : > { %p221_p10 = scmp.eq.s32.totalorder %s1776_s16, 3  ;;  %s1803_s24 = smov (%p39_p3, %s1801_s24), 0 }
  0x48   : > { %1777 = sst [smem:[#allocation20_spill]] %s1803_s24  ;;  %p1603_p11 = por %p1489_p1, %p59_p8 }
  0x49   : > { %p1607_p12 = por %p221_p10, %p53_p7  ;;  %s41_s7 = ssub.s32 %s1374_s10, %s1803_s24 }
  0x4a   : > { %p227_p13 = scmp.eq.s32.totalorder %s873_s23, 3  ;;  %s43_s21 = sor.u32 %s42_s18, %s41_s7 }
  0x4b   : > { %p70_p0 = scmp.eq.s32.totalorder %s41_s7, 0  ;;  %p44_p9 = scmp.eq.s32.totalorder %s43_s21, 0 }
  0x4c   : > { %p1613_p2 = por %p227_p13, %p59_p8  ;;  %p976_p3 = scmp.lt.s32.totalorder %s1378_s11, 4 }
  0x4d   : > { %s1618_s12 = scalar_select %p70_p0, %s1346_s26, %s72_s14  }
  0x4e   : > { %s1780_s25 = scalar_select %p1613_p2, 1, 0 }
  0x4f   : > { %s1621_s1 = scalar_select %p44_p9, %s1358_s29, %s46_s17  }
  0x50   : > { %1781 = sst [smem:[#allocation21_spill]] %s1780_s25  ;;  %s315_s3 = sand.u32 1, %s1358_s29  }
  0x51   : > { %s882_s16 = sshll.u32 %s315_s3, 2  ;;  %s883_s2 = sshll.u32 %s1374_s10, 1 }
  0x52   : > { %s323_s4 = sadd.s32 %s1370_s9, %s883_s2  ;;  %s319_s22 = scalar_lea.vmem [#allocation3], %s882_s16 }
  0x53   : > { %s329_s24 = sshll.u32 %s319_s22, 4  ;;  %s884_s23 = sshll.u32 %s323_s4, 2  ;;  %s330_s24 = int_to_ptr.vmem [resolvable:$true] %s329_s24 }
  0x54   : > { %s325_s21 = scalar_lea.hbm %s1743_s0, %s884_s23  ;;  %p967_p7 = pnand %p976_p3, %p1590_p6 }
  0x55   : > { %s327_s25 = sshll.u32 %s325_s21, 4  ;;  %s316_s14 = scalar_lea.sflag [#allocation4], %s315_s3  ;;  %s328_s25 = int_to_ptr.hbm [resolvable:$true] %s327_s25 }
  0x56   : > { %969 = dma.hbm_to_vmem [thread:$0]  (!%p967_p7), %s328_s25, 64, %s330_s24, %s316_s14  }
  0x57   : > { %338 = sbr.rel (%p1505_p5) target bundleno = 1177 (0x499), region = 48  ;;  %s1635_s2 = sand.u32 (!%p1505_p5), 1, %s1354_s28  }
  0x58   : > { %s886_s4 = sshll.u32 (!%p1505_p5), %s1635_s2, 2  ;;  %s341_s22 = scalar_lea.sflag (!%p1505_p5), [#allocation4], %s1635_s2 }
  0x59   : > { %s344_s17 = scalar_lea.vmem (!%p1505_p5), [#allocation3], %s886_s4 }
  0x5c   : > { %1321 = dma.done.wait (%p1603_p11), %s341_s22, 64  }
  0x5d   : > { %1323 = vsyncadd (%p1603_p11), %s341_s22, 4294967232 }
  0x5e   : > { %1325 = dma.done.wait (%p1498_p4), [#allocation7], 256  }
  0x5f   : > { %1327 = vsyncadd (%p1498_p4), [#allocation7], 4294967040 }
  0x60   : > { %1329 = dma.done.wait (%p1489_p1), [#allocation10], 512  }
  0x61   : > { %1331 = vsyncadd (%p1489_p1), [#allocation10], 4294966784  ;;  %v932_v0 = vld [vmem:[#allocation9 + $0x8] sm:$0xff]  ;;  %vm445_vm0 = vcmask 64512   ;;  %v933_v1 = vld [vmem:[#allocation6] sm:$0xff]  ;;  %vm418_vm1 = vcmask 261120  }
  0x62   : > { %428 = vmatpush.bf16.msra.mxu0 %v932_v0  ;;  %v931_v2 = vld [vmem:[#allocation9] sm:$0xff]  ;;  %v450_v3 = vsel %vm445_vm0, %v933_v1, 0  ;;  %v397_v4 = vld [vmem:[%s344_s17] sm:$0xf]  ;;  %s1386_s19 = smov 112   ;;  %s1387_s15 = smov 104  }
  0x63   : > { %459 = vmatpush.bf16.xpose.msra.mxu1 %v450_v3  ;;  %569 = vrot.lane.b32.xlu2 %v933_v1, %s1386_s19  ;;  %s1388_s24 = smov 120   ;;  %v1080_v7 = vld [vmem:[%s1748_s5] ss:$0 sm:$0xff]  ;;  %vm465_vm2 = vcmask 130048   ;;  %v934_v38 = vld [vmem:[#allocation8] sm:$0xff]  ;;  %vm501_vm3 = vcmask 60416  }
  0x64   : > { %630 = vrot.lane.b32.xlu1 %v933_v1, %s1387_s15  ;;  %508 = vrot.lane.b32.xlu0 %v933_v1, %s1388_s24  ;;  %s1389_s20 = smov 8   ;;  %s1390_s25 = smov 16   ;;  %vm565_vm4 = vcmask 126016   ;;  %vm626_vm5 = vcmask 191616   ;;  %vm687_vm6 = vcmask 257216  }
  0x65   : > { %494 = vmatpush.bf16.msra.mxu2 %v934_v38  ;;  %s1391_s3 = smov 24   ;;  %s1782_s16 = sld [smem:[#allocation18_spill]] }
  0x66   : > { %429 = vmatpush.bf16.msra.mxu0 %v931_v2  ;;  %s925_s23 = sshll.u32 %s1366_s8, 1  ;;  %s889_s21 = sshll.u32 %s1635_s2, 3 }
  0x67   : > { %s1783_s22 = sld [smem:[#allocation27_spill]]  ;;  %s395_s13 = scalar_lea.vmem [#allocation12], %s889_s21 }
  0x68   : > { %s742_s30 = sshll.u32 %s395_s13, 4  ;;  %s728_s8 = scalar_lea.sflag [#allocation5], %s1635_s2  ;;  %s743_s30 = int_to_ptr.vmem [resolvable:$true] %s742_s30 }
  0x69   : > { %898 = vmatmul.msk.bf16.vlgmr.msra.gmra.mxu0 %vm418_vm1, %v397_v4 }
  0x6b   : > { %s738_s18 = sadd.s32 %s1782_s16, %s925_s23 }
  0x6c   : > { %s926_s7 = sshll.u32 %s738_s18, 3 }
  0x6d   : > { %s740_s17 = scalar_lea.hbm %s1783_s22, %s926_s7  ;;  %s1268_s18 = scalar_lea.hbm %s1783_s22, 32 }
  0xbd   : > { %v570_v5 = vpop.permute.xlu2 %569 }
  0xbe   : > { %v575_v6 = vsel %vm445_vm0, %v570_v5, 0 }
  0xbf   : > { %584 = vmatpush.bf16.xpose.msrb.mxu0 %v575_v6 }
  0xd6   : > { %v509_v14 = vpop.permute.xlu0 %508  ;;  %v631_v17 = vpop.permute.xlu1 %630 }
  0xd7   : > { %v514_v15 = vsel %vm445_vm0, %v509_v14, 0  ;;  %v636_v18 = vsel %vm445_vm0, %v631_v17, 0 }
  0xd8   : > { %523 = vmatpush.bf16.xpose.msra.mxu3 %v514_v15 }
  0xe0   : > { %645 = vmatpush.bf16.xpose.msrb.mxu3 %v636_v18 }
  0xe6   : > { %v431_v8 = vpop.f32.mrf.mxu0 }
  0xe7   : > { %v432_v9 = vadd.f32 %v1080_v7, %v431_v8 }
  0xe9   : > { %v435_v10 = vpack.c.bf16 %v432_v9, %v432_v9 }
  0xeb   : > { %v504_v11 = vunpack.c.l.b16 %v435_v10  ;;  %903 = vmatmul.msk.bf16.vlgmr.msra.gmra.mxu1 %vm445_vm0, %v435_v10 }
  0xed   : > { %v505_v12 = vpack.c.b16 %v504_v11, %v504_v11 }
  0xee   : > { %v433_v13 = vpop.f32.mrf.mxu0 }
  0xef   : > { %567 = vrot.lane.b32.xlu2 %v505_v12, %s1386_s19  ;;  %628 = vrot.lane.b32.xlu1 %v505_v12, %s1387_s15 }
  0xf0   : > { %506 = vrot.lane.b32.xlu0 %v505_v12, %s1388_s24 }
 0x149   : > { %v568_v16 = vpop.permute.xlu2 %567 }
 0x14a   : > { %911 = vmatmul.msk.bf16.vlgmr.msrb.gmra.mxu0 %vm445_vm0, %v568_v16 }
 0x161   : > { %v629_v23 = vpop.permute.xlu1 %628 }
 0x162   : > { %v507_v19 = vpop.permute.xlu0 %506 }
 0x163   : > { %909 = vmatmul.msk.bf16.vlgmr.msra.gmra.mxu3 %vm445_vm0, %v507_v19 }
 0x168   : > { %v461_v20 = vpop.f32.mrf.mxu1 }
 0x169   : > { %v466_v21 = vsel %vm465_vm2, %v461_v20, -inf }
 0x16a   : > { %467 = vmax.xlane.f32.xlu0 %v466_v21 }
 0x170   : > { %v463_v22 = vpop.f32.mrf.mxu1 }
 0x171   : > { %v936_v22 = vld [vmem:[#allocation11 + $0x8] sm:$0xff] }
 0x172   : > { %719 = vmatpush.bf16.msra.mxu0 %v936_v22 }
 0x173   : > { %913 = vmatmul.msk.bf16.vlgmr.msrb.gmra.mxu3 %vm445_vm0, %v629_v23  ;;  %v935_v23 = vld [vmem:[#allocation11] sm:$0xff] }
 0x176   : > { %720 = vmatpush.bf16.msra.mxu0 %v935_v23 }
 0x1c7   : > { %v586_v24 = vpop.f32.mrf.mxu0 }
 0x1c8   : > { %v590_v37 = vsel %vm465_vm2, %v586_v24, -inf }
 0x1cf   : > { %v588_v25 = vpop.f32.mrf.mxu0 }
 0x1dd   : > { %v468_v26 = vpop.xlane.xlu0 %467 }
 0x1de   : > { %v469_v27 = vsub.f32 %v461_v20, %v468_v26 }
 0x1e0   : > { %v470_v28 = vmul.f32 1.442695, %v469_v27 }
 0x1e2   : > { %1082 = vpow2.f32 %v470_v28 }
 0x1e6   : > { %v525_v29 = vpop.f32.mrf.mxu3 }
 0x1e7   : > { %v529_v30 = vsel %vm465_vm2, %v525_v29, -inf }
 0x1e8   : > { %v1083_v31 = vpop.eup %1082  ;;  %530 = vmax.xlane.f32.xlu1 %v529_v30 }
 0x1e9   : > { %v472_v32 = vsel %vm465_vm2, %v1083_v31, 0.0 }
 0x1ea   : > { %473 = vadd.xlane.f32.xlu0 %v472_v32 }
 0x1ee   : > { %v527_v33 = vpop.f32.mrf.mxu3 }
 0x1f6   : > { %v647_v34 = vpop.f32.mrf.mxu3 }
 0x1f7   : > { %v651_v35 = vsel %vm465_vm2, %v647_v34, -inf }
 0x1f8   : > { %652 = vmax.xlane.f32.xlu2 %v651_v35 }
 0x1fe   : > { %v649_v36 = vpop.f32.mrf.mxu3 }
 0x200   : > { %591 = vmax.xlane.f32.xlu2 %v590_v37 }
 0x218   : > { %541 = vrot.lane.b32.xlu2 %v934_v38, %s1388_s24  ;;  %s1784_s24 = sld [smem:[#allocation26_spill]] }
 0x21e   : > { %v1081_v27 = vld [vmem:[%s1784_s24] ss:$0 sm:$0xff] }
 0x25b   : > { %v531_v46 = vpop.xlane.xlu1 %530 }
 0x25c   : > { %v532_v50 = vsub.f32 %v525_v29, %v531_v46 }
 0x25d   : > { %v474_v39 = vpop.xlane.xlu0 %473 }
 0x25e   : > { %1084 = vrcp.f32 %v474_v39  ;;  %v533_v53 = vmul.f32 1.442695, %v532_v50 }
 0x264   : > { %v1085_v40 = vpop.eup %1084 }
 0x265   : > { %v476_v41 = vmul.f32 %v1085_v40, %v1083_v31 }
 0x267   : > { %v477_v42 = vpack.c.bf16 %v476_v41, %v476_v41 }
 0x269   : > { %908 = vmatmul.msk.bf16.vlgmr.msra.gmra.mxu2 %vm465_vm2, %v477_v42 }
 0x26b   : > { %v653_v43 = vpop.xlane.xlu2 %652 }
 0x26c   : > { %v654_v44 = vsub.f32 %v647_v34, %v653_v43 }
 0x26e   : > { %v655_v45 = vmul.f32 1.442695, %v654_v44 }
 0x270   : > { %1086 = vpow2.f32 %v655_v45 }
 0x273   : > { %v592_v47 = vpop.xlane.xlu2 %591 }
 0x274   : > { %v593_v48 = vsub.f32 %v586_v24, %v592_v47 }
 0x276   : > { %v1087_v49 = vpop.eup %1086  ;;  %v594_v51 = vmul.f32 1.442695, %v593_v48 }
 0x277   : > { %v657_v52 = vsel %vm465_vm2, %v1087_v49, 0.0 }
 0x278   : > { %1088 = vpow2.f32 %v594_v51  ;;  %658 = vadd.xlane.f32.xlu0 %v657_v52 }
 0x279   : > { %1090 = vpow2.f32 %v533_v53 }
 0x27b   : > { %v542_v58 = vpop.permute.xlu2 %541 }
 0x27c   : > { %554 = vmatpush.bf16.msrb.mxu2 %v542_v58 }
 0x27e   : > { %v1089_v54 = vpop.eup %1088 }
 0x27f   : > { %v596_v55 = vsel %vm465_vm2, %v1089_v54, 0.0  ;;  %v1091_v56 = vpop.eup %1090 }
 0x280   : > { %597 = vadd.xlane.f32.xlu1 %v596_v55  ;;  %v535_v57 = vsel %vm465_vm2, %v1091_v56, 0.0 }
 0x288   : > { %536 = vadd.xlane.f32.xlu1 %v535_v57 }
 0x28c   : > { %663 = vrot.lane.b32.xlu0 %v934_v38, %s1387_s15 }
 0x2a1   : > { %602 = vrot.lane.b32.xlu1 %v934_v38, %s1386_s19 }
 0x2eb   : > { %v659_v63 = vpop.xlane.xlu0 %658 }
 0x2ec   : > { %v496_v59 = vpop.f32.mrf.mxu2 }
 0x2ed   : > { %v500_v60 = vpack.c.bf16 %v496_v59, %v496_v59 }
 0x2ef   : > { %502 = vst.msk [vmem:[#allocation2] sm:$0xf] %vm501_vm3, %v500_v60 }
 0x2f3   : > { %v598_v61 = vpop.xlane.xlu1 %597 }
 0x2f4   : > { %v498_v62 = vpop.f32.mrf.mxu2 }
 0x2fb   : > { %v537_v0 = vpop.xlane.xlu1 %536 }
 0x2fc   : > { %1092 = vrcp.f32 %v537_v0 }
 0x2fd   : > { %1094 = vrcp.f32 %v659_v63 }
 0x2fe   : > { %v664_v1 = vpop.permute.xlu0 %663  ;;  %1096 = vrcp.f32 %v598_v61 }
 0x2ff   : > { %676 = vmatpush.bf16.msra.mxu2 %v664_v1 }
 0x302   : > { %v1093_v2 = vpop.eup %1092 }
 0x303   : > { %v539_v3 = vmul.f32 %v1093_v2, %v1091_v56  ;;  %v1095_v5 = vpop.eup %1094 }
 0x304   : > { %v1097_v6 = vpop.eup %1096  ;;  %v661_v7 = vmul.f32 %v1095_v5, %v1087_v49 }
 0x305   : > { %v540_v4 = vpack.c.bf16 %v539_v3, %v539_v3  ;;  %v600_v8 = vmul.f32 %v1097_v6, %v1089_v54 }
 0x306   : > { %v662_v10 = vpack.c.bf16 %v661_v7, %v661_v7 }
 0x307   : > { %910 = vmatmul.msk.bf16.vlgmr.msrb.gmra.mxu2 %vm465_vm2, %v540_v4  ;;  %v601_v11 = vpack.c.bf16 %v600_v8, %v600_v8 }
 0x313   : > { %v603_v9 = vpop.permute.xlu1 %602 }
 0x314   : > { %615 = vmatpush.bf16.msrb.mxu1 %v603_v9 }
 0x317   : > { %912 = vmatmul.msk.bf16.vlgmr.msrb.gmra.mxu1 %vm465_vm2, %v601_v11  ;;  %914 = vmatmul.msk.bf16.vlgmr.msra.gmra.mxu2 %vm465_vm2, %v662_v10 }
 0x38a   : > { %v556_v12 = vpop.f32.mrf.mxu2 }
 0x38b   : > { %v560_v13 = vpack.c.bf16 %v556_v12, %v556_v12 }
 0x38d   : > { %562 = vrot.lane.b32.xlu2 %v560_v13, %s1389_s20  ;;  %s744_s20 = sshll.u32 %s740_s17, 4  ;;  %s745_s20 = int_to_ptr.hbm [resolvable:$true] %s744_s20 }
 0x392   : > { %v558_v14 = vpop.f32.mrf.mxu2 }
 0x394   : > { %v617_v15 = vpop.f32.mrf.mxu1 }
 0x395   : > { %v621_v16 = vpack.c.bf16 %v617_v15, %v617_v15 }
 0x397   : > { %623 = vrot.lane.b32.xlu0 %v621_v16, %s1390_s25  ;;  %s1262_s25 = sshra.s32 %s745_s20, 4  ;;  %s1263_s25 = int_to_ptr.hbm [resolvable:$true] %s1262_s25 }
 0x398   : > { %p1269_p6 = scmp.lt.s32.totalorder %s1263_s25, %s1783_s22 }
 0x39a   : > { %v678_v17 = vpop.f32.mrf.mxu2 }
 0x39b   : > { %v682_v18 = vpack.c.bf16 %v678_v17, %v678_v17 }
 0x39c   : > { %v619_v19 = vpop.f32.mrf.mxu1 }
 0x39d   : > { %684 = vrot.lane.b32.xlu2 %v682_v18, %s1391_s3  ;;  %s1264_s3 = scalar_lea.hbm %s1263_s25, 8 }
 0x39e   : > { %p1265_p1 = scmp.ne.s32.totalorder %s1263_s25, %s1264_s3  ;;  %p1270_p8 = scmp.lt.s32.totalorder %s1268_s18, %s1264_s3 }
 0x3a0   : > { %p1266_p4 = pnand %p1265_p1, %p1607_p12  ;;  %p1271_p10 = por %p1270_p8, %p1269_p6 }
 0x3a2   : > { %v680_v20 = vpop.f32.mrf.mxu2  ;;  %p1267_p5 = pneg %p1266_p4 }
 0x3a4   : > { %p1272_p11 = pnand %p1271_p10, %p1267_p5 }
 0x3e7   : > { %v563_v21 = vpop.permute.xlu2 %562 }
 0x3e8   : > { %566 = vst.msk [vmem:[#allocation2] sm:$0xf] %vm565_vm4, %v563_v21 }
 0x3f7   : > { %v685_v25 = vpop.permute.xlu2 %684 }
 0x409   : > { %v624_v24 = vpop.permute.xlu0 %623 }
 0x40a   : > { %627 = vst.msk [vmem:[#allocation2] sm:$0xf] %vm626_vm5, %v624_v24 }
 0x40b   : > { %688 = vst.msk [vmem:[#allocation2] sm:$0xf] %vm687_vm6, %v685_v25 }
 0x412   : > { %v689_v26 = vld [vmem:[#allocation2] sm:$0xf] }
 0x413   : > { %923 = vmatmul.msk.bf16.vlgmr.msra.gmra.mxu0 %vm418_vm1, %v689_v26 }
 0x490   : > { %v722_v28 = vpop.f32.mrf.mxu0 }
 0x491   : > { %v723_v29 = vadd.f32 %v1081_v27, %v722_v28 }
 0x493   : > { %726 = vst.msk [vmem:[%s395_s13] sm:$0xff] %vm418_vm1, %v723_v29 }
 0x494   : > { %1275 = shalt.err (!%p1272_p11)
}
 0x495   : > { %951 = dma.vmem_to_hbm [thread:$0]  (%p1607_p12), %s743_s30, 128, %s745_s20, %s728_s8  }
 0x498   : > { %v724_v30 = vpop.f32.mrf.mxu0 }
 0x499 PF: > { %p979_p13 = scmp.ge.s32.totalorder %s1378_s11, 2  ;;  %s756_s14 = sand.u32 1, %s1350_s27  }
 0x49a   : > { %s757_s4 = scalar_lea.sflag [#allocation5], %s756_s14 }
 0x49b   : > { %p971_p0 = pnand %p979_p13, %p1613_p2 }
 0x49d   : > { %p972_p9 = pneg %p971_p0 }
 0x49f   : > { %1333 = dma.done.wait (%p972_p9), %s757_s4, 128  }
 0x4a0   : > { %1335 = vsyncadd (%p972_p9), %s757_s4, 4294967168  ;;  %s25_s11 = sadd.s32 1, %s1378_s11   ;;  %s1786_s24 = sld [smem:[#allocation17_spill]] }
 0x4a1   : > { %p22_p3 = scmp.ge.s32.totalorder %s25_s11, 6   ;;  %s1787_s6 = sld [smem:[#allocation19_spill]] }
 0x4a2   : > { %s1788_s17 = sld [smem:[#allocation20_spill]]  ;;  %s1789_s25 = smov %s1346_s26 }
 0x4a3   : > { %s1790_s26 = smov %s1618_s12  ;;  %s1791_s27 = smov %s1354_s28 }
 0x4a4   : > { %s1792_s28 = smov %s1358_s29  ;;  %s1793_s29 = smov %s1621_s1 }
 0x4a5   : > { %s1794_s30 = smov %s1370_s9  ;;  %s1795_s8 = smov %s1374_s10 }
 0x4a6   :  { %24 = sbr.rel (!%p22_p3) target bundleno = 18 (0x12), region = 111 }
 0x4a7   : > { %s1796_s9 = smov %s1787_s6 }
 0x4a8   : > { %s1797_s10 = smov %s1788_s17 }
 0x4ab   :  { %763 = vsyncpa [#allocation4], 1 }
 0x4ac   :  { %765 = vsyncpa [#allocation4 + $0x1], 1 }
 0x4ad   :  { %766 = vsyncpa [#allocation7], 1 }
 0x4ae   :  { %767 = vsyncpa [#allocation10], 1 }
 0x4af   :  { %768 = vsyncpa [#allocation5], 1 }
 0x4b0   :  { %770 = vsyncpa [#allocation5 + $0x1], 1 }

</bundles_post_ra>
